<compile_context>
chip_gen: v5e
topology: v5e:2x2
jax: 0.10.0
libtpu: 0.0.40
codegen_flags: <defaults>
</compile_context>

<pallas_src>
import math

import jax
import jax.numpy as jnp
from jax.experimental import pallas as pl
from jax.experimental.pallas import tpu as pltpu


def make_positional_encoding_table(embed_dim: int,
                                   max_len: int = 8000,
                                   freq: float = 16000.0,
                                   dtype=jnp.float32):
    """Equivalent of PositionalEncoding.__init__, stored 2-D: (max_len, embed_dim)."""
    if embed_dim % 2 != 0:
        # The PyTorch original also breaks for odd embed_dim (shape mismatch on
        # pe[:, 1::2]); make the constraint explicit here.
        raise ValueError(f"embed_dim must be even, got {embed_dim}")
    position = jnp.arange(max_len, dtype=jnp.float32)[:, None]            # (max_len, 1)
    div = jnp.exp(jnp.arange(0, embed_dim, 2, dtype=jnp.float32)
                  * (-math.log(freq) / embed_dim))                        # (embed_dim // 2,)
    angles = position * div                                               # (max_len, embed_dim // 2)
    pe = jnp.zeros((max_len, embed_dim), dtype=jnp.float32)
    pe = pe.at[:, 0::2].set(jnp.sin(angles))
    pe = pe.at[:, 1::2].set(jnp.cos(angles))
    return pe.astype(dtype)                                               # (max_len, embed_dim)


def _pos_enc_kernel(x_ref, pe_ref, o_ref):
    # x_ref: (TS, B, TE); pe_ref: (TS, TE).  Broadcast pe over the batch
    # (sublane) axis in-register — the VALU slot is otherwise idle here.
    o_ref[...] = x_ref[...] + pe_ref[...][:, None, :]


def _round_up(v: int, m: int) -> int:
    return ((v + m - 1) // m) * m


def _tile_plan(seq_len: int, batch: int, embed_dim: int, itemsize: int,
               target_bytes: int = 4 << 20):
    """Choose (block_seq, block_emb).

    * block_emb: full embed extent unless a single 8-row seq slab would blow the
      per-tile byte target (huge batch*embed rows), in which case embed is tiled
      in lane-dense chunks (multiples of 128).
    * block_seq: largest multiple of 8 whose x tile is ~target_bytes, capped so
      the seq grid always has >= 2 steps (v7x megacore) when seq_len > 8.
    """
    # 1) embed tiling only when needed (keeps lane-dense multiples of 128).
    if embed_dim <= 128 or 8 * batch * embed_dim * itemsize <= target_bytes:
        block_emb = embed_dim
    else:
        lanes = max(1, (target_bytes // (8 * batch * itemsize)) // 128)
        block_emb = min(embed_dim, max(128, int(lanes) * 128))

    # 2) seq tile sized for ~target_bytes per x tile.
    row_bytes = batch * block_emb * itemsize
    block_seq = max(8, (int(target_bytes) // max(int(row_bytes), 1)) // 8 * 8)
    block_seq = min(block_seq, 2048)

    # 3) never collapse the seq grid to a single step when there is work to
    #    split: grid=(1,...) leaves v7x's second TensorCore idle.
    if seq_len > 8:
        block_seq = min(block_seq, _round_up(pl.cdiv(seq_len, 2), 8))
    block_seq = max(8, block_seq)
    return block_seq, block_emb


def positional_encoding_forward(x, pe_table, *, block_seq=None, block_emb=None,
                                donate_x=False):
    """x: (seq_len, batch, embed_dim); pe_table: (max_len, embed_dim)."""
    seq_len, batch, embed_dim = x.shape
    max_len, pe_dim = pe_table.shape
    if pe_dim != embed_dim:
        raise ValueError(f"pe_table shape {pe_table.shape} incompatible with x {x.shape}")
    if seq_len > max_len:
        raise ValueError(f"seq_len {seq_len} exceeds max_len {max_len}")

    if pe_table.dtype != x.dtype:
        pe_table = pe_table.astype(x.dtype)

    itemsize = jnp.dtype(x.dtype).itemsize
    auto_bs, auto_be = _tile_plan(seq_len, batch, embed_dim, itemsize)
    if block_seq is None:
        block_seq = auto_bs
    if block_emb is None:
        block_emb = auto_be

    grid = (pl.cdiv(seq_len, block_seq), pl.cdiv(embed_dim, block_emb))

    # x/out blocks: batch full-extent on sublanes, embed lane-dense (full extent
    # or a multiple of 128).  pe blocks are 2-D — no padded size-1 sublane dim.
    x_spec = pl.BlockSpec((block_seq, batch, block_emb), lambda s, e: (s, 0, e))
    pe_spec = pl.BlockSpec((block_seq, block_emb), lambda s, e: (s, e))
    out_spec = pl.BlockSpec((block_seq, batch, block_emb), lambda s, e: (s, 0, e))

    # Explicit scoped-VMEM limit derived from actual residency (double-buffered
    # x + out + pe tiles, plus headroom) so the per-generation defaults
    # (16 MiB v5e / 32 MiB v6e+v7x scoped) never force smaller pipelining.
    x_tile_bytes = block_seq * batch * block_emb * itemsize
    pe_tile_bytes = block_seq * block_emb * itemsize
    resident = 2 * (2 * x_tile_bytes + pe_tile_bytes)     # 2-deep buffers
    vmem_limit = int(min(48 << 20, max(16 << 20, resident * 3 // 2)))

    kwargs = {}
    if donate_x:
        # In-place add: only request the alias if the caller truly donates x
        # (e.g. jax.jit donate_argnums); otherwise XLA inserts a defensive copy
        # of x and this becomes a ~1.5x traffic regression instead of a win.
        kwargs["input_output_aliases"] = {0: 0}

    # TODO(synk): for tiny batch (B <= 2) the pe stream is ~1/3 of traffic;
    # generating pe in-kernel (iota + sin/cos on the idle EUP) would hide it.

    return pl.pallas_call(
        _pos_enc_kernel,
        out_shape=jax.ShapeDtypeStruct(x.shape, x.dtype),
        grid_spec=pltpu.PrefetchScalarGridSpec(
            num_scalar_prefetch=0,
            grid=grid,
            in_specs=[x_spec, pe_spec],
            out_specs=out_spec,
        ),
        compiler_params=pltpu.CompilerParams(
            dimension_semantics=("parallel", "parallel"),  # no reduction axes
            vmem_limit_bytes=vmem_limit,
        ),
        **kwargs,
    )(x, pe_table)


if __name__ == "__main__":
    # Small deterministic example in the module's (seq, batch, embed) layout.
    seq_len, batch, embed_dim = 128, 8, 256
    max_len, freq = 512, 16000.0

    key = jax.random.PRNGKey(0)
    x = jax.random.normal(key, (seq_len, batch, embed_dim), dtype=jnp.float32)

    pe_table = make_positional_encoding_table(embed_dim, max_len=max_len, freq=freq)

    # Reference: exactly the PyTorch forward, x + pos_e[:seq_len] broadcast over batch.
    ref = x + pe_table[:seq_len][:, None, :]

    # 1) Auto tile plan: >= 2 seq blocks (grid (2, 1) here) so the parallel seq
    #    axis can shard across both v7x TensorCores.
    out = jax.block_until_ready(positional_encoding_forward(x, pe_table))
    assert out.shape == x.shape and out.dtype == x.dtype
    assert jnp.allclose(out, ref, atol=1e-6, rtol=1e-6), "mismatch vs reference (auto tiles)"

    # 2) Explicit small tiles: exercises a multi-step 2-D grid (seq AND embed tiling).
    out2 = jax.block_until_ready(
        positional_encoding_forward(x, pe_table, block_seq=32, block_emb=128))
    assert jnp.allclose(out2, ref, atol=1e-6, rtol=1e-6), "mismatch vs reference (explicit tiles)"

    print("KERNEL_OK")
</pallas_src>

<mosaic_0001>
module attributes {stable_mosaic.version = 11 : i64} {
  func.func @_pos_enc_kernel(%arg0: i32, %arg1: i32, %arg2: memref<64x8x256xf32, #tpu.memory_space<vmem>>, %arg3: memref<64x256xf32, #tpu.memory_space<vmem>>, %arg4: memref<64x8x256xf32, #tpu.memory_space<vmem>>) attributes {dimension_semantics = [#tpu.dimension_semantics<parallel>, #tpu.dimension_semantics<parallel>], iteration_bounds = array<i64: 2, 1>, scalar_prefetch = 0 : i64, scratch_operands = 0 : i64, tpu.core_type = #tpu.core_type<tc>, window_params = [{transform_indices = @transform_0, window_bounds = array<i64: 64, 8, 256>}, {transform_indices = @transform_1, window_bounds = array<i64: 64, 256>}, {transform_indices = @transform_2, window_bounds = array<i64: 64, 8, 256>}]} {
    %c0 = arith.constant 0 : index
    %c0_0 = arith.constant 0 : index
    %c0_1 = arith.constant 0 : index
    %0 = vector.load %arg2[%c0, %c0_0, %c0_1] : memref<64x8x256xf32, #tpu.memory_space<vmem>>, vector<64x8x256xf32>
    %c0_2 = arith.constant 0 : index
    %c0_3 = arith.constant 0 : index
    %1 = vector.load %arg3[%c0_2, %c0_3] : memref<64x256xf32, #tpu.memory_space<vmem>>, vector<64x256xf32>
    %2 = vector.shape_cast %1 : vector<64x256xf32> to vector<64x1x256xf32>
    %3 = vector.broadcast %2 : vector<64x1x256xf32> to vector<64x8x256xf32>
    %4 = arith.addf %0, %3 : vector<64x8x256xf32>
    %c0_4 = arith.constant 0 : index
    %c0_5 = arith.constant 0 : index
    %c0_6 = arith.constant 0 : index
    %5 = vector.load %arg4[%c0_4, %c0_5, %c0_6] : memref<64x8x256xf32, #tpu.memory_space<vmem>>, vector<64x8x256xf32>
    tpu.vector_store %arg4[%c0_4, %c0_5, %c0_6], %4 {strides = array<i32>} : memref<64x8x256xf32, #tpu.memory_space<vmem>>, vector<64x8x256xf32>,
    return
  }
  func.func @transform_0(%arg0: i32, %arg1: i32) -> (i32, i32, i32) {
    %c0_i32 = arith.constant 0 : i32
    %c0_i32_0 = arith.constant 0 : i32
    return %arg0, %c0_i32, %arg1 : i32, i32, i32
  }
  func.func @transform_1(%arg0: i32, %arg1: i32) -> (i32, i32) {
    %c0_i32 = arith.constant 0 : i32
    return %arg0, %arg1 : i32, i32
  }
  func.func @transform_2(%arg0: i32, %arg1: i32) -> (i32, i32, i32) {
    %c0_i32 = arith.constant 0 : i32
    %c0_i32_0 = arith.constant 0 : i32
    return %arg0, %c0_i32, %arg1 : i32, i32, i32
  }
}

</mosaic_0001>

<bundles_post_ra>
// kernel: tpu_custom_call.1
= control target key start
LH: loop header
LB: loop body
LE: loop exit
PB: predicated region body
PF: predicated region fallthrough
CT: control target
= control target key end

     0   :  { %7 = vsyncpa [#allocation3], 0  ;;  %s2073_s0 = inlined_call_operand.hbm [shape: f32[128,8,256], index: 0, kind: input, shape index: {}]   ;;  %s2074_s1 = inlined_call_operand.hbm [shape: f32[512,256], index: 1, kind: input, shape index: {}]   ;;  %s2075_s2 = inlined_call_operand.hbm [shape: f32[128,8,256], index: 2, kind: output, shape index: {}]  }
   0x1   :  { %9 = vsyncpa [#allocation3 + $0x1], 0 }
   0x2   :  { %10 = vsyncpa [#allocation6], 0 }
   0x3   :  { %12 = vsyncpa [#allocation6 + $0x1], 0 }
   0x4   :  { %13 = vsyncpa [#allocation4], 0 }
   0x5   :  { %15 = vsyncpa [#allocation4 + $0x1], 0  ;;  %s1442_s9 = smov 0   ;;  %s1444_s10 = smov 0  }
   0x6   :  { %s1446_s11 = smov 0   ;;  %s1448_s12 = smov 0  }
   0x7   :  { %s1450_s13 = smov 0   ;;  %s1452_s14 = smov 0  }
   0x8 LB: > { %s1176_s15 = sadd.s32 4294967295, %s1421_s14   ;;  %s1177_s16 = sadd.s32 4294967294, %s1421_s14   ;;  %s1421_s14 = sphi %s1452_s14, %s21_s14   ;;  %s1417_s13 = sphi %s1450_s13, %s2085_s13   ;;  %s1413_s12 = sphi %s1448_s12, %s2084_s12   ;;  %s1409_s11 = sphi %s1446_s11, %s2083_s11   ;;  %s1405_s10 = sphi %s1444_s10, %s2082_s10   ;;  %s1401_s9 = sphi %s1442_s9, %s2081_s9  }
   0x9   : > { %s33_s17 = sadd.s32 1, %s1417_s13  ;;  %s42_s18 = sadd.s32 1, %s1409_s11 }
   0xa   : > { %p35_p0 = scmp.ge.s32.totalorder %s33_s17, 2  ;;  %p49_p1 = scmp.ne.s32.totalorder %s1409_s11, %s1405_s10 }
   0xb   : > { %p50_p2 = scmp.eq.s32.totalorder %s1421_s14, 0  ;;  %p55_p3 = scmp.ne.s32.totalorder %s1405_s10, %s1401_s9 }
   0xc   : > { %s2087_s17 = smov (%p35_p0, %s33_s17), 0  ;;  %p56_p5 = scmp.eq.s32.totalorder %s1176_s15, 0 }
   0xd   : > { %p1483_p4 = por %p50_p2, %p49_p1  ;;  %s37_s20 = ssub.s32 %s1417_s13, %s2087_s17 }
   0xe   : > { %p109_p6 = scmp.eq.s32.totalorder %s1176_s15, 1  ;;  %p40_p7 = scmp.eq.s32.totalorder %s37_s20, 0 }
   0xf   : > { %p1489_p8 = por %p56_p5, %p55_p3  ;;  %p115_p10 = scmp.eq.s32.totalorder %s1177_s16, 1 }
  0x10   : > { %p1493_p9 = por %p109_p6, %p49_p1  ;;  %p1179_p12 = scmp.ge.s32.totalorder %s1421_s14, 2 }
  0x11   : > { %s1498_s23 = scalar_select %p40_p7, %s1409_s11, %s42_s18  }
  0x12   : > { %p1500_p11 = por %p115_p10, %p55_p3  ;;  %p1221_p13 = scmp.lt.s32.totalorder %s1421_s14, 2 }
  0x13   : > { %s1507_s25 = sand.u32 1, %s1409_s11   ;;  %s1199_s27 = sshll.u32 %s1417_s13, 10 }
  0x14   : > { %s1180_s26 = sshll.u32 %s1507_s25, 10  ;;  %s147_s30 = scalar_lea.hbm %s2073_s0, %s1199_s27 }
  0x15   : > { %s139_s3 = scalar_lea.vmem [#allocation2], %s1180_s26  ;;  %s148_s5 = sshll.u32 %s147_s30, 4  ;;  %s149_s5 = int_to_ptr.hbm [resolvable:$true] %s148_s5 }
  0x16   : > { %s150_s4 = sshll.u32 %s139_s3, 4  ;;  %p1516_p0 = pnand %p1221_p13, %p1483_p4  ;;  %s151_s4 = int_to_ptr.vmem [resolvable:$true] %s150_s4 }
  0x17   : > { %p1188_p1 = scmp.ge.s32.totalorder %s1421_s14, 1  ;;  %s136_s7 = scalar_lea.sflag [#allocation3], %s1507_s25 }
  0x18   : > { %s1423_s8 = smov 256   ;;  %s1424_s15 = smov 16  }
  0x19   : > { %1213 = dma.hbm_to_vmem [thread:$0]  (!%p1516_p0), %s149_s5, 16384, %s151_s4, %s136_s7, %s1423_s8, %s1423_s8, %s1424_s15  }
  0x1a   : > { %p183_p2 = scmp.lt.s32.totalorder %s1421_s14, 3  ;;  %s1184_s16 = sshll.u32 %s1507_s25, 7 }
  0x1b   : > { %s1201_s18 = sshll.u32 %s1417_s13, 7  ;;  %s164_s27 = scalar_lea.vmem [#allocation5], %s1184_s16 }
  0x1c   : > { %p184_p3 = pnand %p1188_p1, %p183_p2  ;;  %s172_s19 = scalar_lea.hbm %s2074_s1, %s1201_s18 }
  0x1d   : > { %s175_s28 = sshll.u32 %s164_s27, 4  ;;  %s173_s29 = sshll.u32 %s172_s19, 4  ;;  %s176_s28 = int_to_ptr.vmem [resolvable:$true] %s175_s28  ;;  %s174_s29 = int_to_ptr.hbm [resolvable:$true] %s173_s29 }
  0x1e   : > { %s161_s30 = scalar_lea.sflag [#allocation6], %s1507_s25  ;;  %187 = sbr.rel (%p184_p3) target bundleno = 178 (0xb2), region = 28 }
  0x1f   : > { %1216 = dma.hbm_to_vmem [thread:$0]  (!%p1516_p0), %s174_s29, 2048, %s176_s28, %s161_s30, %s1423_s8, %s1423_s8, %s1424_s15  }
  0x20   : > { %s1534_s3 = sand.u32 (!%p184_p3), 1, %s1405_s10  }
  0x21   : > { %s1189_s4 = sshll.u32 (!%p184_p3), %s1534_s3, 10  ;;  %s190_s5 = scalar_lea.sflag (!%p184_p3), [#allocation3], %s1534_s3 }
  0x22   : > { %s1540_s7 = scalar_lea.vmem (!%p184_p3), [#allocation2], %s1189_s4 }
  0x23   : > { %1388 = dma.done.wait (%p1489_p8), %s190_s5, 16384  }
  0x24   : > { %1390 = vsyncadd (%p1489_p8), %s190_s5, 4294950912  ;;  %s1190_s25 = sshll.u32 %s1534_s3, 7  ;;  %s200_s6 = scalar_lea.sflag [#allocation6], %s1534_s3 }
  0x25   : > { %s1548_s8 = scalar_lea.vmem [#allocation5], %s1190_s25 }
  0x26   : > { %1392 = dma.done.wait (%p1489_p8), %s200_s6, 2048  }
  0x27   : > { %1394 = vsyncadd (%p1489_p8), %s200_s6, 4294965248  ;;  %v364_v0 = vld [vmem:[%s1548_s8] sm:$0xff]  ;;  %v365_v1 = vld [vmem:[%s1548_s8 + $0x8] sm:$0xff]  ;;  %vm404_vm0 = vcmask 1040384   ;;  %vm406_vm1 = vcmask 1041409   ;;  %vm409_vm2 = vcmask 1042434  }
  0x28   : > { %vm412_vm3 = vcmask 1043459   ;;  %v396_v2 = vrot.slane %v365_v1, 7  ;;  %vm415_vm4 = vcmask 1044484   ;;  %vm418_vm5 = vcmask 1045509   ;;  %v236_v3 = vld [vmem:[%s1540_s7] sm:$0xff]  ;;  %v237_v5 = vld [vmem:[%s1540_s7 + $0x8] sm:$0xff] }
  0x29   : > { %vm421_vm6 = vcmask 1046534   ;;  %vm424_vm7 = vcmask 1046528   ;;  %v238_v13 = vld [vmem:[%s1540_s7 + $0x10] sm:$0xff]  ;;  %v239_v14 = vld [vmem:[%s1540_s7 + $0x18] sm:$0xff]  ;;  %v240_v23 = vld [vmem:[%s1540_s7 + $0x20] sm:$0xff]  ;;  %s1573_s21 = scalar_lea.vmem [#allocation7], %s1189_s4 }
  0x2a   : > { %v405_v4 = vsel %vm404_vm0, %v364_v0, %v396_v2  ;;  %v407_v6 = vsel %vm406_vm1, %v364_v0, %v396_v2  ;;  %v410_v7 = vsel %vm409_vm2, %v364_v0, %v396_v2  ;;  %v413_v8 = vsel %vm412_vm3, %v364_v0, %v396_v2  ;;  %v241_v24 = vld [vmem:[%s1540_s7 + $0x28] sm:$0xff]  ;;  %v242_v25 = vld [vmem:[%s1540_s7 + $0x30] sm:$0xff]  ;;  %v243_v29 = vld [vmem:[%s1540_s7 + $0x38] sm:$0xff]  ;;  %s1203_s15 = sshll.u32 %s1413_s12, 10  ;;  %s1060_s20 = sshll.u32 %s1573_s21, 4  ;;  %s1061_s20 = int_to_ptr.vmem [resolvable:$true] %s1060_s20 }
  0x2b   : > { %v532_v9 = vperm.slane %v405_v4, 0  ;;  %v533_v10 = vperm.slane %v405_v4, 1  ;;  %v408_v11 = vrot.slane %v407_v6, 1  ;;  %v411_v12 = vrot.slane %v410_v7, 2  ;;  %v367_v35 = vld [vmem:[%s1548_s8 + $0x18] sm:$0xff]  ;;  %v244_v39 = vld [vmem:[%s1540_s7 + $0x40] sm:$0xff]  ;;  %s1059_s18 = scalar_lea.hbm %s2075_s2, %s1203_s15 }
  0x2c   : > { %v414_v15 = vrot.slane %v413_v8, 3  ;;  %v416_v16 = vsel %vm415_vm4, %v364_v0, %v396_v2  ;;  %v419_v17 = vsel %vm418_vm5, %v364_v0, %v396_v2  ;;  %v422_v18 = vsel %vm421_vm6, %v364_v0, %v396_v2  ;;  %v245_v40 = vld [vmem:[%s1540_s7 + $0x48] sm:$0xff]  ;;  %v246_v45 = vld [vmem:[%s1540_s7 + $0x50] sm:$0xff]  ;;  %v247_v53 = vld [vmem:[%s1540_s7 + $0x58] sm:$0xff]  ;;  %s1062_s26 = sshll.u32 %s1059_s18, 4  ;;  %s1045_s19 = scalar_lea.sflag [#allocation4], %s1534_s3  ;;  %s1063_s26 = int_to_ptr.hbm [resolvable:$true] %s1062_s26 }
  0x2d   : > { %v788_v19 = vadd.f32 %v532_v9, %v236_v3  ;;  %v789_v20 = vadd.f32 %v533_v10, %v237_v5  ;;  %v534_v21 = vperm.slane %v408_v11, 0  ;;  %v535_v22 = vperm.slane %v408_v11, 1  ;;  %v1585_v49 = vld [vmem:[%s1548_s8 + $0x10] sm:$0xff]  ;;  %v248_v54 = vld [vmem:[%s1540_s7 + $0x60] sm:$0xff]  ;;  %v249_v60 = vld [vmem:[%s1540_s7 + $0x68] sm:$0xff]  ;;  %s1349_s27 = sshra.s32 %s1063_s26, 4  ;;  %s1350_s27 = int_to_ptr.hbm [resolvable:$true] %s1349_s27 }
  0x2e   : > { %v536_v26 = vperm.slane %v411_v12, 0  ;;  %v537_v27 = vperm.slane %v411_v12, 1  ;;  %v538_v28 = vperm.slane %v414_v15, 0  ;;  %v539_v30 = vperm.slane %v414_v15, 1  ;;  %v251_v4 = vld [vmem:[%s1540_s7 + $0x78] sm:$0xff]  ;;  %v252_v9 = vld [vmem:[%s1540_s7 + $0x80] sm:$0xff]  ;;  %p1356_p7 = scmp.lt.s32.totalorder %s1350_s27, %s2075_s2 }
  0x2f   : > { %916 = vst [vmem:[%s1573_s21] sm:$0xff] %v788_v19  ;;  %v790_v31 = vadd.f32 %v534_v21, %v238_v13  ;;  %v791_v32 = vadd.f32 %v535_v22, %v239_v14  ;;  %v417_v33 = vrot.slane %v416_v16, 4  ;;  %v420_v34 = vrot.slane %v419_v17, 5  ;;  %v253_v14 = vld [vmem:[%s1540_s7 + $0x88] sm:$0xff]  ;;  %v254_v17 = vld [vmem:[%s1540_s7 + $0x90] sm:$0xff]  ;;  %v255_v22 = vld [vmem:[%s1540_s7 + $0x98] sm:$0xff]  ;;  %s1351_s28 = scalar_lea.hbm %s1350_s27, 1024 }
  0x30   : > { %917 = vst [vmem:[%s1573_s21 + $0x8] sm:$0xff] %v789_v20  ;;  %v792_v36 = vadd.f32 %v536_v26, %v240_v23  ;;  %v793_v37 = vadd.f32 %v537_v27, %v241_v24  ;;  %v794_v38 = vadd.f32 %v538_v28, %v242_v25  ;;  %v795_v41 = vadd.f32 %v539_v30, %v243_v29  ;;  %v369_v25 = vld [vmem:[%s1548_s8 + $0x28] sm:$0xff]  ;;  %v256_v27 = vld [vmem:[%s1540_s7 + $0xa0] sm:$0xff]  ;;  %p1352_p4 = scmp.ne.s32.totalorder %s1350_s27, %s1351_s28  ;;  %s1355_s4 = scalar_lea.hbm %s2075_s2, 2048 }
  0x31   : > { %918 = vst [vmem:[%s1573_s21 + $0x10] sm:$0xff] %v790_v31  ;;  %v540_v42 = vperm.slane %v417_v33, 0  ;;  %v541_v43 = vperm.slane %v417_v33, 1  ;;  %v542_v44 = vperm.slane %v420_v34, 0  ;;  %v543_v46 = vperm.slane %v420_v34, 1  ;;  %v257_v31 = vld [vmem:[%s1540_s7 + $0xa8] sm:$0xff]  ;;  %p1357_p8 = scmp.lt.s32.totalorder %s1355_s4, %s1351_s28 }
  0x32   : > { %919 = vst [vmem:[%s1573_s21 + $0x18] sm:$0xff] %v791_v32  ;;  %v423_v47 = vrot.slane %v422_v18, 6  ;;  %v425_v48 = vsel %vm424_vm7, %v396_v2, %v364_v0  ;;  %v1587_v50 = vrot.slane %v367_v35, 7  ;;  %v250_v0 = vld [vmem:[%s1540_s7 + $0x70] sm:$0xff]  ;;  %p1353_p5 = pnand %p1352_p4, %p1493_p9 }
  0x33   : > { %920 = vst [vmem:[%s1573_s21 + $0x20] sm:$0xff] %v792_v36  ;;  %v796_v51 = vadd.f32 %v540_v42, %v244_v39  ;;  %v797_v52 = vadd.f32 %v541_v43, %v245_v40  ;;  %v426_v57 = vrot.slane %v425_v48, 7  ;;  %v798_v59 = vadd.f32 %v542_v44, %v246_v45  ;;  %v258_v35 = vld [vmem:[%s1540_s7 + $0xb0] sm:$0xff]  ;;  %v259_v40 = vld [vmem:[%s1540_s7 + $0xb8] sm:$0xff]  ;;  %v1643_v43 = vld [vmem:[%s1548_s8 + $0x20] sm:$0xff]  ;;  %p1358_p10 = por %p1357_p8, %p1356_p7 }
  0x34   : > { %921 = vst [vmem:[%s1573_s21 + $0x28] sm:$0xff] %v793_v37  ;;  %v544_v55 = vperm.slane %v423_v47, 0  ;;  %v545_v56 = vperm.slane %v423_v47, 1  ;;  %v427_v58 = vsel %vm404_vm0, %v1585_v49, %v1587_v50  ;;  %v428_v61 = vsel %vm406_vm1, %v1585_v49, %v1587_v50  ;;  %v260_v45 = vld [vmem:[%s1540_s7 + $0xc0] sm:$0xff]  ;;  %v261_v48 = vld [vmem:[%s1540_s7 + $0xc8] sm:$0xff]  ;;  %p1354_p6 = pneg %p1353_p5 }
  0x35   : > { %922 = vst [vmem:[%s1573_s21 + $0x30] sm:$0xff] %v794_v38  ;;  %v430_v62 = vsel %vm409_vm2, %v1585_v49, %v1587_v50  ;;  %v799_v63 = vadd.f32 %v543_v46, %v247_v53  ;;  %v546_v1 = vperm.slane %v426_v57, 0  ;;  %v547_v2 = vperm.slane %v426_v57, 1 }
  0x36   : > { %923 = vst [vmem:[%s1573_s21 + $0x38] sm:$0xff] %v795_v41  ;;  %v800_v3 = vadd.f32 %v544_v55, %v248_v54  ;;  %v548_v5 = vperm.slane %v427_v58, 0  ;;  %v429_v6 = vrot.slane %v428_v61, 1  ;;  %v431_v7 = vrot.slane %v430_v62, 2  ;;  %p1359_p13 = pnand %p1358_p10, %p1354_p6 }
  0x37   : > { %924 = vst [vmem:[%s1573_s21 + $0x40] sm:$0xff] %v796_v51  ;;  %v801_v8 = vadd.f32 %v545_v56, %v249_v60  ;;  %v549_v10 = vperm.slane %v427_v58, 1  ;;  %v432_v11 = vsel %vm412_vm3, %v1585_v49, %v1587_v50  ;;  %v434_v12 = vsel %vm415_vm4, %v1585_v49, %v1587_v50  ;;  %v263_v56 = vld [vmem:[%s1540_s7 + $0xd8] sm:$0xff] }
  0x38   : > { %925 = vst [vmem:[%s1573_s21 + $0x48] sm:$0xff] %v797_v52  ;;  %v802_v13 = vadd.f32 %v546_v1, %v250_v0  ;;  %v550_v15 = vperm.slane %v429_v6, 0  ;;  %v803_v16 = vadd.f32 %v547_v2, %v251_v4  ;;  %v551_v18 = vperm.slane %v429_v6, 1  ;;  %v262_v52 = vld [vmem:[%s1540_s7 + $0xd0] sm:$0xff]  ;;  %v265_v0 = vld [vmem:[%s1540_s7 + $0xe8] sm:$0xff] }
  0x39   : > { %926 = vst [vmem:[%s1573_s21 + $0x50] sm:$0xff] %v798_v59  ;;  %v433_v19 = vrot.slane %v432_v11, 3  ;;  %v436_v20 = vsel %vm418_vm5, %v1585_v49, %v1587_v50  ;;  %v804_v21 = vadd.f32 %v548_v5, %v252_v9  ;;  %v552_v23 = vperm.slane %v431_v7, 0  ;;  %v264_v59 = vld [vmem:[%s1540_s7 + $0xe0] sm:$0xff]  ;;  %v266_v4 = vld [vmem:[%s1540_s7 + $0xf0] sm:$0xff] }
  0x3a   : > { %927 = vst [vmem:[%s1573_s21 + $0x58] sm:$0xff] %v799_v63  ;;  %v435_v24 = vrot.slane %v434_v12, 4  ;;  %v805_v26 = vadd.f32 %v549_v10, %v253_v14  ;;  %v553_v28 = vperm.slane %v431_v7, 1  ;;  %v438_v29 = vsel %vm421_vm6, %v1585_v49, %v1587_v50  ;;  %v268_v12 = vld [vmem:[%s1540_s7 + $0x100] sm:$0xff] }
  0x3b   : > { %928 = vst [vmem:[%s1573_s21 + $0x60] sm:$0xff] %v800_v3  ;;  %v806_v30 = vadd.f32 %v550_v15, %v254_v17  ;;  %v554_v32 = vperm.slane %v433_v19, 0  ;;  %v437_v33 = vrot.slane %v436_v20, 5  ;;  %v807_v34 = vadd.f32 %v551_v18, %v255_v22  ;;  %v270_v20 = vld [vmem:[%s1540_s7 + $0x110] sm:$0xff] }
  0x3c   : > { %929 = vst [vmem:[%s1573_s21 + $0x68] sm:$0xff] %v801_v8  ;;  %v555_v36 = vperm.slane %v433_v19, 1  ;;  %v440_v37 = vsel %vm424_vm7, %v1587_v50, %v1585_v49  ;;  %v1638_v38 = vrot.slane %v369_v25, 7  ;;  %v808_v39 = vadd.f32 %v552_v23, %v256_v27  ;;  %v267_v8 = vld [vmem:[%s1540_s7 + $0xf8] sm:$0xff] }
  0x3d   : > { %930 = vst [vmem:[%s1573_s21 + $0x70] sm:$0xff] %v802_v13  ;;  %v556_v41 = vperm.slane %v435_v24, 0  ;;  %v439_v42 = vrot.slane %v438_v29, 6  ;;  %v809_v44 = vadd.f32 %v553_v28, %v257_v31  ;;  %v557_v46 = vperm.slane %v435_v24, 1  ;;  %v271_v24 = vld [vmem:[%s1540_s7 + $0x118] sm:$0xff]  ;;  %v272_v29 = vld [vmem:[%s1540_s7 + $0x120] sm:$0xff] }
  0x3e   : > { %931 = vst [vmem:[%s1573_s21 + $0x78] sm:$0xff] %v803_v16  ;;  %v810_v47 = vadd.f32 %v554_v32, %v258_v35  ;;  %v558_v49 = vperm.slane %v437_v33, 0  ;;  %v441_v50 = vrot.slane %v440_v37, 7  ;;  %v811_v51 = vadd.f32 %v555_v36, %v259_v40  ;;  %v269_v16 = vld [vmem:[%s1540_s7 + $0x108] sm:$0xff]  ;;  %v371_v27 = vld [vmem:[%s1548_s8 + $0x38] sm:$0xff]  ;;  %v274_v37 = vld [vmem:[%s1540_s7 + $0x130] sm:$0xff] }
  0x3f   : > { %932 = vst [vmem:[%s1573_s21 + $0x80] sm:$0xff] %v804_v21  ;;  %v559_v53 = vperm.slane %v437_v33, 1  ;;  %v443_v54 = vsel %vm406_vm1, %v1643_v43, %v1638_v38  ;;  %v812_v55 = vadd.f32 %v556_v41, %v260_v45  ;;  %v560_v57 = vperm.slane %v439_v42, 0  ;;  %v273_v33 = vld [vmem:[%s1540_s7 + $0x128] sm:$0xff] }
  0x40   : > { %933 = vst [vmem:[%s1573_s21 + $0x88] sm:$0xff] %v805_v26  ;;  %v813_v58 = vadd.f32 %v557_v46, %v261_v48  ;;  %v561_v60 = vperm.slane %v439_v42, 1  ;;  %v442_v61 = vsel %vm404_vm0, %v1643_v43, %v1638_v38  ;;  %v445_v62 = vsel %vm409_vm2, %v1643_v43, %v1638_v38 }
  0x41   : > { %934 = vst [vmem:[%s1573_s21 + $0x90] sm:$0xff] %v806_v30  ;;  %v814_v63 = vadd.f32 %v558_v49, %v262_v52  ;;  %v562_v1 = vperm.slane %v441_v50, 0  ;;  %v444_v2 = vrot.slane %v443_v54, 1  ;;  %v815_v3 = vadd.f32 %v559_v53, %v263_v56  ;;  %v276_v49 = vld [vmem:[%s1540_s7 + $0x140] sm:$0xff]  ;;  %v278_v54 = vld [vmem:[%s1540_s7 + $0x150] sm:$0xff] }
  0x42   : > { %935 = vst [vmem:[%s1573_s21 + $0x98] sm:$0xff] %v807_v34  ;;  %v563_v5 = vperm.slane %v441_v50, 1  ;;  %v447_v6 = vsel %vm412_vm3, %v1643_v43, %v1638_v38  ;;  %v816_v7 = vadd.f32 %v560_v57, %v264_v59  ;;  %v564_v9 = vperm.slane %v442_v61, 0 }
  0x43   : > { %936 = vst [vmem:[%s1573_s21 + $0xa0] sm:$0xff] %v808_v39  ;;  %v446_v10 = vrot.slane %v445_v62, 2  ;;  %v817_v11 = vadd.f32 %v561_v60, %v265_v0  ;;  %v565_v13 = vperm.slane %v442_v61, 1  ;;  %v449_v14 = vsel %vm415_vm4, %v1643_v43, %v1638_v38  ;;  %v280_v61 = vld [vmem:[%s1540_s7 + $0x160] sm:$0xff] }
  0x44   : > { %937 = vst [vmem:[%s1573_s21 + $0xa8] sm:$0xff] %v809_v44  ;;  %v818_v15 = vadd.f32 %v562_v1, %v266_v4  ;;  %v566_v17 = vperm.slane %v444_v2, 0  ;;  %v448_v18 = vrot.slane %v447_v6, 3  ;;  %v819_v19 = vadd.f32 %v563_v5, %v267_v8  ;;  %v275_v44 = vld [vmem:[%s1540_s7 + $0x138] sm:$0xff]  ;;  %v282_v6 = vld [vmem:[%s1540_s7 + $0x170] sm:$0xff] }
  0x45   : > { %938 = vst [vmem:[%s1573_s21 + $0xb0] sm:$0xff] %v810_v47  ;;  %v567_v21 = vperm.slane %v444_v2, 1  ;;  %v451_v22 = vsel %vm418_vm5, %v1643_v43, %v1638_v38  ;;  %v820_v23 = vadd.f32 %v564_v9, %v268_v12  ;;  %v568_v25 = vperm.slane %v446_v10, 0  ;;  %v1705_v47 = vld [vmem:[%s1548_s8 + $0x30] sm:$0xff]  ;;  %v281_v2 = vld [vmem:[%s1540_s7 + $0x168] sm:$0xff] }
  0x46   : > { %939 = vst [vmem:[%s1573_s21 + $0xb8] sm:$0xff] %v811_v51  ;;  %v450_v26 = vrot.slane %v449_v14, 4  ;;  %v821_v28 = vadd.f32 %v565_v13, %v269_v16  ;;  %v569_v30 = vperm.slane %v446_v10, 1  ;;  %v453_v31 = vsel %vm421_vm6, %v1643_v43, %v1638_v38  ;;  %v283_v10 = vld [vmem:[%s1540_s7 + $0x178] sm:$0xff]  ;;  %v284_v14 = vld [vmem:[%s1540_s7 + $0x180] sm:$0xff] }
  0x47   : > { %940 = vst [vmem:[%s1573_s21 + $0xc0] sm:$0xff] %v812_v55  ;;  %v822_v32 = vadd.f32 %v566_v17, %v270_v20  ;;  %v570_v34 = vperm.slane %v448_v18, 0  ;;  %v452_v35 = vrot.slane %v451_v22, 5  ;;  %v823_v36 = vadd.f32 %v567_v21, %v271_v24  ;;  %v286_v22 = vld [vmem:[%s1540_s7 + $0x190] sm:$0xff] }
  0x48   : > { %941 = vst [vmem:[%s1573_s21 + $0xc8] sm:$0xff] %v813_v58  ;;  %v571_v39 = vperm.slane %v448_v18, 1  ;;  %v455_v40 = vsel %vm424_vm7, %v1638_v38, %v1643_v43  ;;  %v1700_v41 = vrot.slane %v371_v27, 7  ;;  %v824_v42 = vadd.f32 %v568_v25, %v272_v29  ;;  %v277_v43 = vld [vmem:[%s1540_s7 + $0x148] sm:$0xff]  ;;  %v279_v58 = vld [vmem:[%s1540_s7 + $0x158] sm:$0xff] }
  0x49   : > { %942 = vst [vmem:[%s1573_s21 + $0xd0] sm:$0xff] %v814_v63  ;;  %v572_v45 = vperm.slane %v450_v26, 0  ;;  %v454_v46 = vrot.slane %v453_v31, 6  ;;  %v825_v48 = vadd.f32 %v569_v30, %v273_v33  ;;  %v573_v50 = vperm.slane %v450_v26, 1  ;;  %v285_v18 = vld [vmem:[%s1540_s7 + $0x188] sm:$0xff]  ;;  %v287_v26 = vld [vmem:[%s1540_s7 + $0x198] sm:$0xff] }
  0x4a   : > { %943 = vst [vmem:[%s1573_s21 + $0xd8] sm:$0xff] %v815_v3  ;;  %v826_v38 = vadd.f32 %v570_v34, %v274_v37  ;;  %v574_v51 = vperm.slane %v452_v35, 0  ;;  %v456_v52 = vrot.slane %v455_v40, 7  ;;  %v827_v53 = vadd.f32 %v571_v39, %v275_v44  ;;  %v373_v29 = vld [vmem:[%s1548_s8 + $0x48] sm:$0xff]  ;;  %v288_v31 = vld [vmem:[%s1540_s7 + $0x1a0] sm:$0xff]  ;;  %v290_v40 = vld [vmem:[%s1540_s7 + $0x1b0] sm:$0xff] }
  0x4b   : > { %944 = vst [vmem:[%s1573_s21 + $0xe0] sm:$0xff] %v816_v7  ;;  %v575_v55 = vperm.slane %v452_v35, 1  ;;  %v458_v56 = vsel %vm406_vm1, %v1705_v47, %v1700_v41  ;;  %v828_v57 = vadd.f32 %v572_v45, %v276_v49  ;;  %v576_v59 = vperm.slane %v454_v46, 0  ;;  %v289_v35 = vld [vmem:[%s1540_s7 + $0x1a8] sm:$0xff] }
  0x4c   : > { %945 = vst [vmem:[%s1573_s21 + $0xe8] sm:$0xff] %v817_v11  ;;  %v829_v60 = vadd.f32 %v573_v50, %v277_v43  ;;  %v577_v62 = vperm.slane %v454_v46, 1  ;;  %v457_v63 = vsel %vm404_vm0, %v1705_v47, %v1700_v41  ;;  %v460_v0 = vsel %vm409_vm2, %v1705_v47, %v1700_v41 }
  0x4d   : > { %946 = vst [vmem:[%s1573_s21 + $0xf0] sm:$0xff] %v818_v15  ;;  %v830_v1 = vadd.f32 %v574_v51, %v278_v54  ;;  %v578_v3 = vperm.slane %v456_v52, 0  ;;  %v459_v4 = vrot.slane %v458_v56, 1  ;;  %v831_v5 = vadd.f32 %v575_v55, %v279_v58  ;;  %v292_v51 = vld [vmem:[%s1540_s7 + $0x1c0] sm:$0xff]  ;;  %v294_v56 = vld [vmem:[%s1540_s7 + $0x1d0] sm:$0xff] }
  0x4e   : > { %947 = vst [vmem:[%s1573_s21 + $0xf8] sm:$0xff] %v819_v19  ;;  %v579_v7 = vperm.slane %v456_v52, 1  ;;  %v462_v8 = vsel %vm412_vm3, %v1705_v47, %v1700_v41  ;;  %v832_v9 = vadd.f32 %v576_v59, %v280_v61  ;;  %v580_v11 = vperm.slane %v457_v63, 0 }
  0x4f   : > { %948 = vst [vmem:[%s1573_s21 + $0x100] sm:$0xff] %v820_v23  ;;  %v461_v12 = vrot.slane %v460_v0, 2  ;;  %v833_v13 = vadd.f32 %v577_v62, %v281_v2  ;;  %v581_v15 = vperm.slane %v457_v63, 1  ;;  %v464_v16 = vsel %vm415_vm4, %v1705_v47, %v1700_v41  ;;  %v296_v63 = vld [vmem:[%s1540_s7 + $0x1e0] sm:$0xff] }
  0x50   : > { %949 = vst [vmem:[%s1573_s21 + $0x108] sm:$0xff] %v821_v28  ;;  %v834_v17 = vadd.f32 %v578_v3, %v282_v6  ;;  %v582_v19 = vperm.slane %v459_v4, 0  ;;  %v463_v20 = vrot.slane %v462_v8, 3  ;;  %v835_v21 = vadd.f32 %v579_v7, %v283_v10  ;;  %v298_v8 = vld [vmem:[%s1540_s7 + $0x1f0] sm:$0xff] }
  0x51   : > { %950 = vst [vmem:[%s1573_s21 + $0x110] sm:$0xff] %v822_v32  ;;  %v583_v23 = vperm.slane %v459_v4, 1  ;;  %v466_v24 = vsel %vm418_vm5, %v1705_v47, %v1700_v41  ;;  %v836_v25 = vadd.f32 %v580_v11, %v284_v14  ;;  %v584_v27 = vperm.slane %v461_v12, 0  ;;  %v297_v4 = vld [vmem:[%s1540_s7 + $0x1e8] sm:$0xff] }
  0x52   : > { %951 = vst [vmem:[%s1573_s21 + $0x118] sm:$0xff] %v823_v36  ;;  %v465_v28 = vrot.slane %v464_v16, 4  ;;  %v837_v30 = vadd.f32 %v581_v15, %v285_v18  ;;  %v585_v32 = vperm.slane %v461_v12, 1  ;;  %v468_v33 = vsel %vm421_vm6, %v1705_v47, %v1700_v41  ;;  %v299_v12 = vld [vmem:[%s1540_s7 + $0x1f8] sm:$0xff]  ;;  %v300_v16 = vld [vmem:[%s1540_s7 + $0x200] sm:$0xff] }
  0x53   : > { %952 = vst [vmem:[%s1573_s21 + $0x120] sm:$0xff] %v824_v42  ;;  %v838_v34 = vadd.f32 %v582_v19, %v286_v22  ;;  %v586_v36 = vperm.slane %v463_v20, 0  ;;  %v467_v37 = vrot.slane %v466_v24, 5  ;;  %v839_v39 = vadd.f32 %v583_v23, %v287_v26  ;;  %v302_v24 = vld [vmem:[%s1540_s7 + $0x210] sm:$0xff] }
  0x54   : > { %953 = vst [vmem:[%s1573_s21 + $0x128] sm:$0xff] %v825_v48  ;;  %v587_v42 = vperm.slane %v463_v20, 1  ;;  %v470_v44 = vsel %vm424_vm7, %v1700_v41, %v1705_v47  ;;  %v1762_v45 = vrot.slane %v373_v29, 7  ;;  %v840_v46 = vadd.f32 %v584_v27, %v288_v31  ;;  %v291_v48 = vld [vmem:[%s1540_s7 + $0x1b8] sm:$0xff]  ;;  %v293_v47 = vld [vmem:[%s1540_s7 + $0x1c8] sm:$0xff] }
  0x55   : > { %954 = vst [vmem:[%s1573_s21 + $0x130] sm:$0xff] %v826_v38  ;;  %v588_v49 = vperm.slane %v465_v28, 0  ;;  %v469_v50 = vrot.slane %v468_v33, 6  ;;  %v1767_v38 = vld [vmem:[%s1548_s8 + $0x40] sm:$0xff]  ;;  %v841_v43 = vadd.f32 %v585_v32, %v289_v35  ;;  %v589_v52 = vperm.slane %v465_v28, 1  ;;  %v301_v20 = vld [vmem:[%s1540_s7 + $0x208] sm:$0xff] }
  0x56   : > { %955 = vst [vmem:[%s1573_s21 + $0x138] sm:$0xff] %v827_v53  ;;  %v842_v41 = vadd.f32 %v586_v36, %v290_v40  ;;  %v590_v53 = vperm.slane %v467_v37, 0  ;;  %v471_v54 = vrot.slane %v470_v44, 7  ;;  %v843_v55 = vadd.f32 %v587_v42, %v291_v48  ;;  %v303_v28 = vld [vmem:[%s1540_s7 + $0x218] sm:$0xff]  ;;  %v304_v33 = vld [vmem:[%s1540_s7 + $0x220] sm:$0xff]  ;;  %v306_v44 = vld [vmem:[%s1540_s7 + $0x230] sm:$0xff] }
  0x57   : > { %956 = vst [vmem:[%s1573_s21 + $0x140] sm:$0xff] %v828_v57  ;;  %v591_v57 = vperm.slane %v467_v37, 1  ;;  %v473_v58 = vsel %vm406_vm1, %v1767_v38, %v1762_v45  ;;  %v844_v59 = vadd.f32 %v588_v49, %v292_v51  ;;  %v592_v61 = vperm.slane %v469_v50, 0  ;;  %v375_v31 = vld [vmem:[%s1548_s8 + $0x58] sm:$0xff]  ;;  %v305_v37 = vld [vmem:[%s1540_s7 + $0x228] sm:$0xff] }
  0x58   : > { %957 = vst [vmem:[%s1573_s21 + $0x148] sm:$0xff] %v829_v60  ;;  %v295_v60 = vld [vmem:[%s1540_s7 + $0x1d8] sm:$0xff]  ;;  %v845_v62 = vadd.f32 %v589_v52, %v293_v47  ;;  %v593_v0 = vperm.slane %v469_v50, 1  ;;  %v475_v2 = vsel %vm409_vm2, %v1767_v38, %v1762_v45  ;;  %v846_v3 = vadd.f32 %v590_v53, %v294_v56  ;;  %v308_v53 = vld [vmem:[%s1540_s7 + $0x240] sm:$0xff] }
  0x59   : > { %958 = vst [vmem:[%s1573_s21 + $0x150] sm:$0xff] %v830_v1  ;;  %v472_v1 = vsel %vm404_vm0, %v1767_v38, %v1762_v45  ;;  %v474_v6 = vrot.slane %v473_v58, 1  ;;  %v847_v7 = vadd.f32 %v591_v57, %v295_v60  ;;  %v477_v10 = vsel %vm412_vm3, %v1767_v38, %v1762_v45  ;;  %v310_v58 = vld [vmem:[%s1540_s7 + $0x250] sm:$0xff] }
  0x5a   : > { %959 = vst [vmem:[%s1573_s21 + $0x158] sm:$0xff] %v831_v5  ;;  %v594_v5 = vperm.slane %v471_v54, 0  ;;  %v848_v11 = vadd.f32 %v592_v61, %v296_v63  ;;  %v476_v14 = vrot.slane %v475_v2, 2  ;;  %v849_v15 = vadd.f32 %v593_v0, %v297_v4 }
  0x5b   : > { %960 = vst [vmem:[%s1573_s21 + $0x160] sm:$0xff] %v832_v9  ;;  %v595_v9 = vperm.slane %v471_v54, 1  ;;  %v479_v18 = vsel %vm415_vm4, %v1767_v38, %v1762_v45  ;;  %v478_v22 = vrot.slane %v477_v10, 3  ;;  %v481_v26 = vsel %vm418_vm5, %v1767_v38, %v1762_v45  ;;  %v314_v10 = vld [vmem:[%s1540_s7 + $0x270] sm:$0xff] }
  0x5c   : > { %961 = vst [vmem:[%s1573_s21 + $0x168] sm:$0xff] %v833_v13  ;;  %v596_v13 = vperm.slane %v472_v1, 0  ;;  %v850_v19 = vadd.f32 %v594_v5, %v298_v8  ;;  %v600_v29 = vperm.slane %v476_v14, 0  ;;  %v483_v35 = vsel %vm421_vm6, %v1767_v38, %v1762_v45 }
  0x5d   : > { %962 = vst [vmem:[%s1573_s21 + $0x170] sm:$0xff] %v834_v17  ;;  %v597_v17 = vperm.slane %v472_v1, 1  ;;  %v851_v23 = vadd.f32 %v595_v9, %v299_v12  ;;  %v482_v40 = vrot.slane %v481_v26, 5  ;;  %v485_v48 = vsel %vm424_vm7, %v1762_v45, %v1767_v38  ;;  %v309_v38 = vld [vmem:[%s1540_s7 + $0x248] sm:$0xff]  ;;  %v312_v1 = vld [vmem:[%s1540_s7 + $0x260] sm:$0xff]  ;;  %v318_v26 = vld [vmem:[%s1540_s7 + $0x290] sm:$0xff] }
  0x5e   : > { %963 = vst [vmem:[%s1573_s21 + $0x178] sm:$0xff] %v835_v21  ;;  %v598_v21 = vperm.slane %v474_v6, 0  ;;  %v852_v27 = vadd.f32 %v596_v13, %v300_v16  ;;  %v1824_v49 = vrot.slane %v375_v31, 7  ;;  %v856_v50 = vadd.f32 %v600_v29, %v304_v33  ;;  %v377_v33 = vld [vmem:[%s1548_s8 + $0x68] sm:$0xff] }
  0x5f   : > { %964 = vst [vmem:[%s1573_s21 + $0x180] sm:$0xff] %v836_v25  ;;  %v599_v25 = vperm.slane %v474_v6, 1  ;;  %v853_v32 = vadd.f32 %v597_v17, %v301_v20  ;;  %v484_v52 = vrot.slane %v483_v35, 6  ;;  %v486_v56 = vrot.slane %v485_v48, 7  ;;  %v313_v6 = vld [vmem:[%s1540_s7 + $0x268] sm:$0xff]  ;;  %v320_v35 = vld [vmem:[%s1540_s7 + $0x2a0] sm:$0xff] }
  0x60   : > { %965 = vst [vmem:[%s1573_s21 + $0x188] sm:$0xff] %v837_v30  ;;  %v480_v30 = vrot.slane %v479_v18, 4  ;;  %v854_v36 = vadd.f32 %v598_v21, %v302_v24  ;;  %v316_v18 = vld [vmem:[%s1540_s7 + $0x280] sm:$0xff]  ;;  %v322_v48 = vld [vmem:[%s1540_s7 + $0x2b0] sm:$0xff] }
  0x61   : > { %966 = vst [vmem:[%s1573_s21 + $0x190] sm:$0xff] %v838_v34  ;;  %v601_v34 = vperm.slane %v476_v14, 1  ;;  %v855_v42 = vadd.f32 %v599_v25, %v303_v28  ;;  %v608_v63 = vperm.slane %v484_v52, 0  ;;  %v609_v2 = vperm.slane %v484_v52, 1  ;;  %v315_v14 = vld [vmem:[%s1540_s7 + $0x278] sm:$0xff] }
  0x62   : > { %967 = vst [vmem:[%s1573_s21 + $0x198] sm:$0xff] %v839_v39  ;;  %v602_v39 = vperm.slane %v478_v22, 0  ;;  %v604_v51 = vperm.slane %v480_v30, 0  ;;  %v605_v54 = vperm.slane %v480_v30, 1  ;;  %v319_v30 = vld [vmem:[%s1540_s7 + $0x298] sm:$0xff] }
  0x63   : > { %968 = vst [vmem:[%s1573_s21 + $0x1a0] sm:$0xff] %v840_v46  ;;  %v603_v46 = vperm.slane %v478_v22, 1  ;;  %v857_v47 = vadd.f32 %v601_v34, %v305_v37  ;;  %v864_v13 = vadd.f32 %v608_v63, %v312_v1  ;;  %v865_v17 = vadd.f32 %v609_v2, %v313_v6  ;;  %v317_v22 = vld [vmem:[%s1540_s7 + $0x288] sm:$0xff] }
  0x64   : > { %969 = vst [vmem:[%s1573_s21 + $0x1a8] sm:$0xff] %v841_v43  ;;  %v307_v43 = vld [vmem:[%s1540_s7 + $0x238] sm:$0xff]  ;;  %v858_v45 = vadd.f32 %v602_v39, %v306_v44  ;;  %v860_v61 = vadd.f32 %v604_v51, %v308_v53  ;;  %v861_v0 = vadd.f32 %v605_v54, %v309_v38  ;;  %v1886_v51 = vrot.slane %v377_v33, 7 }
  0x65   : > { %970 = vst [vmem:[%s1573_s21 + $0x1b0] sm:$0xff] %v842_v41  ;;  %v1829_v41 = vld [vmem:[%s1548_s8 + $0x50] sm:$0xff]  ;;  %v859_v57 = vadd.f32 %v603_v46, %v307_v43 }
  0x66   : > { %971 = vst [vmem:[%s1573_s21 + $0x1b8] sm:$0xff] %v843_v55  ;;  %v606_v55 = vperm.slane %v482_v40, 0  ;;  %v488_v60 = vsel %vm406_vm1, %v1829_v41, %v1824_v49  ;;  %v490_v4 = vsel %vm409_vm2, %v1829_v41, %v1824_v49  ;;  %v492_v12 = vsel %vm412_vm3, %v1829_v41, %v1824_v49 }
  0x67   : > { %972 = vst [vmem:[%s1573_s21 + $0x1c0] sm:$0xff] %v844_v59  ;;  %v607_v59 = vperm.slane %v482_v40, 1  ;;  %v489_v8 = vrot.slane %v488_v60, 1  ;;  %v491_v16 = vrot.slane %v490_v4, 2  ;;  %v494_v20 = vsel %vm415_vm4, %v1829_v41, %v1824_v49  ;;  %v321_v40 = vld [vmem:[%s1540_s7 + $0x2a8] sm:$0xff]  ;;  %v326_v60 = vld [vmem:[%s1540_s7 + $0x2d0] sm:$0xff] }
  0x68   : > { %973 = vst [vmem:[%s1573_s21 + $0x1c8] sm:$0xff] %v845_v62  ;;  %v311_v62 = vld [vmem:[%s1540_s7 + $0x258] sm:$0xff]  ;;  %v862_v5 = vadd.f32 %v606_v55, %v310_v58  ;;  %v493_v24 = vrot.slane %v492_v12, 3  ;;  %v496_v28 = vsel %vm418_vm5, %v1829_v41, %v1824_v49  ;;  %v498_v37 = vsel %vm421_vm6, %v1829_v41, %v1824_v49  ;;  %v324_v55 = vld [vmem:[%s1540_s7 + $0x2c0] sm:$0xff]  ;;  %v330_v12 = vld [vmem:[%s1540_s7 + $0x2f0] sm:$0xff] }
  0x69   : > { %974 = vst [vmem:[%s1573_s21 + $0x1d0] sm:$0xff] %v846_v3  ;;  %v487_v3 = vsel %vm404_vm0, %v1829_v41, %v1824_v49  ;;  %v863_v9 = vadd.f32 %v607_v59, %v311_v62  ;;  %v616_v31 = vperm.slane %v491_v16, 0  ;;  %v497_v44 = vrot.slane %v496_v28, 5  ;;  %v334_v28 = vld [vmem:[%s1540_s7 + $0x310] sm:$0xff] }
  0x6a   : > { %975 = vst [vmem:[%s1573_s21 + $0x1d8] sm:$0xff] %v847_v7  ;;  %v610_v7 = vperm.slane %v486_v56, 0  ;;  %v500_v43 = vsel %vm424_vm7, %v1824_v49, %v1829_v41  ;;  %v499_v54 = vrot.slane %v498_v37, 6  ;;  %v325_v41 = vld [vmem:[%s1540_s7 + $0x2c8] sm:$0xff]  ;;  %v336_v37 = vld [vmem:[%s1540_s7 + $0x320] sm:$0xff] }
  0x6b   : > { %976 = vst [vmem:[%s1573_s21 + $0x1e0] sm:$0xff] %v848_v11  ;;  %v611_v11 = vperm.slane %v486_v56, 1  ;;  %v872_v52 = vadd.f32 %v616_v31, %v320_v35  ;;  %v501_v58 = vrot.slane %v500_v43, 7  ;;  %v379_v35 = vld [vmem:[%s1548_s8 + $0x78] sm:$0xff]  ;;  %v338_v43 = vld [vmem:[%s1540_s7 + $0x330] sm:$0xff] }
  0x6c   : > { %977 = vst [vmem:[%s1573_s21 + $0x1e8] sm:$0xff] %v849_v15  ;;  %v612_v15 = vperm.slane %v487_v3, 0  ;;  %v866_v21 = vadd.f32 %v610_v7, %v314_v10  ;;  %v624_v1 = vperm.slane %v499_v54, 0  ;;  %v625_v4 = vperm.slane %v499_v54, 1 }
  0x6d   : > { %978 = vst [vmem:[%s1573_s21 + $0x1f0] sm:$0xff] %v850_v19  ;;  %v613_v19 = vperm.slane %v487_v3, 1  ;;  %v867_v25 = vadd.f32 %v611_v11, %v315_v14  ;;  %v328_v3 = vld [vmem:[%s1540_s7 + $0x2e0] sm:$0xff] }
  0x6e   : > { %979 = vst [vmem:[%s1573_s21 + $0x1f8] sm:$0xff] %v851_v23  ;;  %v614_v23 = vperm.slane %v489_v8, 0  ;;  %v868_v29 = vadd.f32 %v612_v15, %v316_v18  ;;  %v880_v15 = vadd.f32 %v624_v1, %v328_v3 }
  0x6f   : > { %980 = vst [vmem:[%s1573_s21 + $0x200] sm:$0xff] %v852_v27  ;;  %v615_v27 = vperm.slane %v489_v8, 1  ;;  %v869_v34 = vadd.f32 %v613_v19, %v317_v22  ;;  %v329_v8 = vld [vmem:[%s1540_s7 + $0x2e8] sm:$0xff] }
  0x70   : > { %981 = vst [vmem:[%s1573_s21 + $0x208] sm:$0xff] %v853_v32  ;;  %v495_v32 = vrot.slane %v494_v20, 4  ;;  %v870_v39 = vadd.f32 %v614_v23, %v318_v26  ;;  %v881_v19 = vadd.f32 %v625_v4, %v329_v8  ;;  %v332_v20 = vld [vmem:[%s1540_s7 + $0x300] sm:$0xff] }
  0x71   : > { %982 = vst [vmem:[%s1573_s21 + $0x210] sm:$0xff] %v854_v36  ;;  %v617_v36 = vperm.slane %v491_v16, 1  ;;  %v871_v46 = vadd.f32 %v615_v27, %v319_v30  ;;  %v331_v16 = vld [vmem:[%s1540_s7 + $0x2f8] sm:$0xff] }
  0x72   : > { %983 = vst [vmem:[%s1573_s21 + $0x218] sm:$0xff] %v855_v42  ;;  %v618_v42 = vperm.slane %v493_v24, 0  ;;  %v620_v53 = vperm.slane %v495_v32, 0  ;;  %v621_v56 = vperm.slane %v495_v32, 1  ;;  %v335_v32 = vld [vmem:[%s1540_s7 + $0x318] sm:$0xff] }
  0x73   : > { %984 = vst [vmem:[%s1573_s21 + $0x220] sm:$0xff] %v856_v50  ;;  %v619_v50 = vperm.slane %v493_v24, 1  ;;  %v873_v38 = vadd.f32 %v617_v36, %v321_v40  ;;  %v333_v24 = vld [vmem:[%s1540_s7 + $0x308] sm:$0xff] }
  0x74   : > { %985 = vst [vmem:[%s1573_s21 + $0x228] sm:$0xff] %v857_v47  ;;  %v323_v47 = vld [vmem:[%s1540_s7 + $0x2b8] sm:$0xff]  ;;  %v874_v49 = vadd.f32 %v618_v42, %v322_v48  ;;  %v876_v63 = vadd.f32 %v620_v53, %v324_v55  ;;  %v877_v2 = vadd.f32 %v621_v56, %v325_v41  ;;  %v1948_v53 = vrot.slane %v379_v35, 7 }
  0x75   : > { %986 = vst [vmem:[%s1573_s21 + $0x230] sm:$0xff] %v858_v45  ;;  %v1891_v45 = vld [vmem:[%s1548_s8 + $0x60] sm:$0xff]  ;;  %v875_v59 = vadd.f32 %v619_v50, %v323_v47 }
  0x76   : > { %987 = vst [vmem:[%s1573_s21 + $0x238] sm:$0xff] %v859_v57  ;;  %v622_v57 = vperm.slane %v497_v44, 0  ;;  %v503_v62 = vsel %vm406_vm1, %v1891_v45, %v1886_v51  ;;  %v505_v6 = vsel %vm409_vm2, %v1891_v45, %v1886_v51  ;;  %v507_v14 = vsel %vm412_vm3, %v1891_v45, %v1886_v51 }
  0x77   : > { %988 = vst [vmem:[%s1573_s21 + $0x240] sm:$0xff] %v860_v61  ;;  %v623_v61 = vperm.slane %v497_v44, 1  ;;  %v504_v10 = vrot.slane %v503_v62, 1  ;;  %v506_v18 = vrot.slane %v505_v6, 2  ;;  %v509_v22 = vsel %vm415_vm4, %v1891_v45, %v1886_v51  ;;  %v337_v44 = vld [vmem:[%s1540_s7 + $0x328] sm:$0xff]  ;;  %v342_v62 = vld [vmem:[%s1540_s7 + $0x350] sm:$0xff] }
  0x78   : > { %989 = vst [vmem:[%s1573_s21 + $0x248] sm:$0xff] %v861_v0  ;;  %v327_v0 = vld [vmem:[%s1540_s7 + $0x2d8] sm:$0xff]  ;;  %v878_v7 = vadd.f32 %v622_v57, %v326_v60  ;;  %v508_v26 = vrot.slane %v507_v14, 3  ;;  %v511_v30 = vsel %vm418_vm5, %v1891_v45, %v1886_v51  ;;  %v513_v40 = vsel %vm421_vm6, %v1891_v45, %v1886_v51  ;;  %v340_v57 = vld [vmem:[%s1540_s7 + $0x340] sm:$0xff]  ;;  %v346_v14 = vld [vmem:[%s1540_s7 + $0x370] sm:$0xff] }
  0x79   : > { %990 = vst [vmem:[%s1573_s21 + $0x250] sm:$0xff] %v862_v5  ;;  %v502_v5 = vsel %vm404_vm0, %v1891_v45, %v1886_v51  ;;  %v879_v11 = vadd.f32 %v623_v61, %v327_v0  ;;  %v632_v33 = vperm.slane %v506_v18, 0  ;;  %v512_v48 = vrot.slane %v511_v30, 5  ;;  %v350_v30 = vld [vmem:[%s1540_s7 + $0x390] sm:$0xff] }
  0x7a   : > { %991 = vst [vmem:[%s1573_s21 + $0x258] sm:$0xff] %v863_v9  ;;  %v626_v9 = vperm.slane %v501_v58, 0  ;;  %v515_v47 = vsel %vm424_vm7, %v1886_v51, %v1891_v45  ;;  %v514_v56 = vrot.slane %v513_v40, 6  ;;  %v341_v45 = vld [vmem:[%s1540_s7 + $0x348] sm:$0xff] }
  0x7b   : > { %992 = vst [vmem:[%s1573_s21 + $0x260] sm:$0xff] %v864_v13  ;;  %v627_v13 = vperm.slane %v501_v58, 1  ;;  %v888_v54 = vadd.f32 %v632_v33, %v336_v37  ;;  %v516_v60 = vrot.slane %v515_v47, 7 }
  0x7c   : > { %993 = vst [vmem:[%s1573_s21 + $0x268] sm:$0xff] %v865_v17  ;;  %v628_v17 = vperm.slane %v502_v5, 0  ;;  %v882_v23 = vadd.f32 %v626_v9, %v330_v12  ;;  %v640_v3 = vperm.slane %v514_v56, 0  ;;  %v641_v6 = vperm.slane %v514_v56, 1 }
  0x7d   : > { %994 = vst [vmem:[%s1573_s21 + $0x270] sm:$0xff] %v866_v21  ;;  %v629_v21 = vperm.slane %v502_v5, 1  ;;  %v883_v27 = vadd.f32 %v627_v13, %v331_v16  ;;  %v344_v5 = vld [vmem:[%s1540_s7 + $0x360] sm:$0xff] }
  0x7e   : > { %995 = vst [vmem:[%s1573_s21 + $0x278] sm:$0xff] %v867_v25  ;;  %v630_v25 = vperm.slane %v504_v10, 0  ;;  %v884_v31 = vadd.f32 %v628_v17, %v332_v20  ;;  %v896_v17 = vadd.f32 %v640_v3, %v344_v5  ;;  %v360_v3 = vld [vmem:[%s1540_s7 + $0x3e0] sm:$0xff] }
  0x7f   : > { %996 = vst [vmem:[%s1573_s21 + $0x280] sm:$0xff] %v868_v29  ;;  %v631_v29 = vperm.slane %v504_v10, 1  ;;  %v885_v36 = vadd.f32 %v629_v21, %v333_v24  ;;  %v345_v10 = vld [vmem:[%s1540_s7 + $0x368] sm:$0xff] }
  0x80   : > { %997 = vst [vmem:[%s1573_s21 + $0x288] sm:$0xff] %v869_v34  ;;  %v510_v34 = vrot.slane %v509_v22, 4  ;;  %v886_v42 = vadd.f32 %v630_v25, %v334_v28  ;;  %v897_v21 = vadd.f32 %v641_v6, %v345_v10  ;;  %v348_v22 = vld [vmem:[%s1540_s7 + $0x380] sm:$0xff]  ;;  %v361_v6 = vld [vmem:[%s1540_s7 + $0x3e8] sm:$0xff] }
  0x81   : > { %998 = vst [vmem:[%s1573_s21 + $0x290] sm:$0xff] %v870_v39  ;;  %v633_v39 = vperm.slane %v506_v18, 1  ;;  %v887_v50 = vadd.f32 %v631_v29, %v335_v32  ;;  %v347_v18 = vld [vmem:[%s1540_s7 + $0x378] sm:$0xff] }
  0x82   : > { %999 = vst [vmem:[%s1573_s21 + $0x298] sm:$0xff] %v871_v46  ;;  %v634_v46 = vperm.slane %v508_v26, 0  ;;  %v636_v55 = vperm.slane %v510_v34, 0  ;;  %v637_v58 = vperm.slane %v510_v34, 1  ;;  %v351_v34 = vld [vmem:[%s1540_s7 + $0x398] sm:$0xff] }
  0x83   : > { %1000 = vst [vmem:[%s1573_s21 + $0x2a0] sm:$0xff] %v872_v52  ;;  %v635_v52 = vperm.slane %v508_v26, 1  ;;  %v889_v41 = vadd.f32 %v633_v39, %v337_v44  ;;  %v349_v26 = vld [vmem:[%s1540_s7 + $0x388] sm:$0xff]  ;;  %v352_v39 = vld [vmem:[%s1540_s7 + $0x3a0] sm:$0xff] }
  0x84   : > { %1001 = vst [vmem:[%s1573_s21 + $0x2a8] sm:$0xff] %v873_v38  ;;  %v339_v38 = vld [vmem:[%s1540_s7 + $0x338] sm:$0xff]  ;;  %v890_v51 = vadd.f32 %v634_v46, %v338_v43  ;;  %v892_v1 = vadd.f32 %v636_v55, %v340_v57  ;;  %v893_v4 = vadd.f32 %v637_v58, %v341_v45  ;;  %v353_v46 = vld [vmem:[%s1540_s7 + $0x3a8] sm:$0xff]  ;;  %v356_v58 = vld [vmem:[%s1540_s7 + $0x3c0] sm:$0xff] }
  0x85   : > { %1002 = vst [vmem:[%s1573_s21 + $0x2b0] sm:$0xff] %v874_v49  ;;  %v1953_v49 = vld [vmem:[%s1548_s8 + $0x70] sm:$0xff]  ;;  %v891_v61 = vadd.f32 %v635_v52, %v339_v38  ;;  %v355_v55 = vld [vmem:[%s1540_s7 + $0x3b8] sm:$0xff] }
  0x86   : > { %1003 = vst [vmem:[%s1573_s21 + $0x2b8] sm:$0xff] %v875_v59  ;;  %v638_v59 = vperm.slane %v512_v48, 0  ;;  %v518_v0 = vsel %vm406_vm1, %v1953_v49, %v1948_v53  ;;  %v520_v8 = vsel %vm409_vm2, %v1953_v49, %v1948_v53  ;;  %v522_v16 = vsel %vm412_vm3, %v1953_v49, %v1948_v53  ;;  %v354_v52 = vld [vmem:[%s1540_s7 + $0x3b0] sm:$0xff] }
  0x87   : > { %1004 = vst [vmem:[%s1573_s21 + $0x2c0] sm:$0xff] %v876_v63  ;;  %v639_v63 = vperm.slane %v512_v48, 1  ;;  %v519_v12 = vrot.slane %v518_v0, 1  ;;  %v521_v20 = vrot.slane %v520_v8, 2  ;;  %v524_v24 = vsel %vm415_vm4, %v1953_v49, %v1948_v53  ;;  %v359_v0 = vld [vmem:[%s1540_s7 + $0x3d8] sm:$0xff] }
  0x88   : > { %1005 = vst [vmem:[%s1573_s21 + $0x2c8] sm:$0xff] %v877_v2  ;;  %v343_v2 = vld [vmem:[%s1540_s7 + $0x358] sm:$0xff]  ;;  %v894_v9 = vadd.f32 %v638_v59, %v342_v62  ;;  %v523_v28 = vrot.slane %v522_v16, 3  ;;  %v526_v32 = vsel %vm418_vm5, %v1953_v49, %v1948_v53  ;;  %v357_v59 = vld [vmem:[%s1540_s7 + $0x3c8] sm:$0xff] }
  0x89   : > { %1006 = vst [vmem:[%s1573_s21 + $0x2d0] sm:$0xff] %v878_v7  ;;  %v517_v7 = vsel %vm404_vm0, %v1953_v49, %v1948_v53  ;;  %v895_v13 = vadd.f32 %v639_v63, %v343_v2  ;;  %v648_v35 = vperm.slane %v521_v20, 0  ;;  %v649_v40 = vperm.slane %v521_v20, 1 }
  0x8a   : > { %1007 = vst [vmem:[%s1573_s21 + $0x2d8] sm:$0xff] %v879_v11  ;;  %v642_v11 = vperm.slane %v516_v60, 0  ;;  %v650_v48 = vperm.slane %v523_v28, 0  ;;  %v651_v47 = vperm.slane %v523_v28, 1 }
  0x8b   : > { %1008 = vst [vmem:[%s1573_s21 + $0x2e0] sm:$0xff] %v880_v15  ;;  %v643_v15 = vperm.slane %v516_v60, 1  ;;  %v904_v38 = vadd.f32 %v648_v35, %v352_v39  ;;  %v905_v57 = vadd.f32 %v649_v40, %v353_v46 }
  0x8c   : > { %1009 = vst [vmem:[%s1573_s21 + $0x2e8] sm:$0xff] %v881_v19  ;;  %v644_v19 = vperm.slane %v517_v7, 0  ;;  %v898_v25 = vadd.f32 %v642_v11, %v346_v14  ;;  %v906_v45 = vadd.f32 %v650_v48, %v354_v52  ;;  %v907_v60 = vadd.f32 %v651_v47, %v355_v55 }
  0x8d   : > { %1010 = vst [vmem:[%s1573_s21 + $0x2f0] sm:$0xff] %v882_v23  ;;  %v645_v23 = vperm.slane %v517_v7, 1  ;;  %v899_v29 = vadd.f32 %v643_v15, %v347_v18 }
  0x8e   : > { %1011 = vst [vmem:[%s1573_s21 + $0x2f8] sm:$0xff] %v883_v27  ;;  %v646_v27 = vperm.slane %v519_v12, 0  ;;  %v900_v33 = vadd.f32 %v644_v19, %v348_v22 }
  0x8f   : > { %1012 = vst [vmem:[%s1573_s21 + $0x300] sm:$0xff] %v884_v31  ;;  %v647_v31 = vperm.slane %v519_v12, 1  ;;  %v901_v37 = vadd.f32 %v645_v23, %v349_v26  ;;  %v363_v12 = vld [vmem:[%s1540_s7 + $0x3f8] sm:$0xff] }
  0x90   : > { %1013 = vst [vmem:[%s1573_s21 + $0x308] sm:$0xff] %v885_v36  ;;  %v525_v36 = vrot.slane %v524_v24, 4  ;;  %v902_v44 = vadd.f32 %v646_v27, %v350_v30 }
  0x91   : > { %1014 = vst [vmem:[%s1573_s21 + $0x310] sm:$0xff] %v886_v42  ;;  %v528_v42 = vsel %vm421_vm6, %v1953_v49, %v1948_v53  ;;  %v903_v43 = vadd.f32 %v647_v31, %v351_v34 }
  0x92   : > { %1015 = vst [vmem:[%s1573_s21 + $0x318] sm:$0xff] %v887_v50  ;;  %v527_v50 = vrot.slane %v526_v32, 5  ;;  %v652_v56 = vperm.slane %v525_v36, 0 }
  0x93   : > { %1016 = vst [vmem:[%s1573_s21 + $0x320] sm:$0xff] %v888_v54  ;;  %v530_v54 = vsel %vm424_vm7, %v1948_v53, %v1953_v49 }
  0x94   : > { %1017 = vst [vmem:[%s1573_s21 + $0x328] sm:$0xff] %v889_v41  ;;  %v529_v41 = vrot.slane %v528_v42, 6  ;;  %v654_v53 = vperm.slane %v527_v50, 0  ;;  %v531_v49 = vrot.slane %v530_v54, 7  ;;  %v655_v62 = vperm.slane %v527_v50, 1 }
  0x95   : > { %1018 = vst [vmem:[%s1573_s21 + $0x330] sm:$0xff] %v890_v51  ;;  %v653_v51 = vperm.slane %v525_v36, 1  ;;  %v908_v63 = vadd.f32 %v652_v56, %v356_v58 }
  0x96   : > { %1019 = vst [vmem:[%s1573_s21 + $0x338] sm:$0xff] %v891_v61  ;;  %v358_v61 = vld [vmem:[%s1540_s7 + $0x3d0] sm:$0xff]  ;;  %v658_v7 = vperm.slane %v531_v49, 0  ;;  %v911_v8 = vadd.f32 %v655_v62, %v359_v0  ;;  %v659_v10 = vperm.slane %v531_v49, 1 }
  0x97   : > { %1020 = vst [vmem:[%s1573_s21 + $0x340] sm:$0xff] %v892_v1  ;;  %v656_v1 = vperm.slane %v529_v41, 0  ;;  %v909_v2 = vadd.f32 %v653_v51, %v357_v59  ;;  %v910_v5 = vadd.f32 %v654_v53, %v358_v61 }
  0x98   : > { %1021 = vst [vmem:[%s1573_s21 + $0x348] sm:$0xff] %v893_v4  ;;  %v657_v4 = vperm.slane %v529_v41, 1  ;;  %v915_v15 = vadd.f32 %v659_v10, %v363_v12 }
  0x99   : > { %1022 = vst [vmem:[%s1573_s21 + $0x350] sm:$0xff] %v894_v9  ;;  %v362_v9 = vld [vmem:[%s1540_s7 + $0x3f0] sm:$0xff]  ;;  %v912_v11 = vadd.f32 %v656_v1, %v360_v3 }
  0x9a   : > { %1023 = vst [vmem:[%s1573_s21 + $0x358] sm:$0xff] %v895_v13  ;;  %v913_v13 = vadd.f32 %v657_v4, %v361_v6  ;;  %v914_v14 = vadd.f32 %v658_v7, %v362_v9 }
  0x9b   : > { %1024 = vst [vmem:[%s1573_s21 + $0x360] sm:$0xff] %v896_v17 }
  0x9c   : > { %1025 = vst [vmem:[%s1573_s21 + $0x368] sm:$0xff] %v897_v21 }
  0x9d   : > { %1026 = vst [vmem:[%s1573_s21 + $0x370] sm:$0xff] %v898_v25 }
  0x9e   : > { %1027 = vst [vmem:[%s1573_s21 + $0x378] sm:$0xff] %v899_v29 }
  0x9f   : > { %1028 = vst [vmem:[%s1573_s21 + $0x380] sm:$0xff] %v900_v33 }
  0xa0   : > { %1029 = vst [vmem:[%s1573_s21 + $0x388] sm:$0xff] %v901_v37 }
  0xa1   : > { %1030 = vst [vmem:[%s1573_s21 + $0x390] sm:$0xff] %v902_v44 }
  0xa2   : > { %1031 = vst [vmem:[%s1573_s21 + $0x398] sm:$0xff] %v903_v43 }
  0xa3   : > { %1032 = vst [vmem:[%s1573_s21 + $0x3a0] sm:$0xff] %v904_v38 }
  0xa4   : > { %1033 = vst [vmem:[%s1573_s21 + $0x3a8] sm:$0xff] %v905_v57 }
  0xa5   : > { %1034 = vst [vmem:[%s1573_s21 + $0x3b0] sm:$0xff] %v906_v45 }
  0xa6   : > { %1035 = vst [vmem:[%s1573_s21 + $0x3b8] sm:$0xff] %v907_v60 }
  0xa7   : > { %1036 = vst [vmem:[%s1573_s21 + $0x3c0] sm:$0xff] %v908_v63 }
  0xa8   : > { %1037 = vst [vmem:[%s1573_s21 + $0x3c8] sm:$0xff] %v909_v2 }
  0xa9   : > { %1038 = vst [vmem:[%s1573_s21 + $0x3d0] sm:$0xff] %v910_v5 }
  0xaa   : > { %1039 = vst [vmem:[%s1573_s21 + $0x3d8] sm:$0xff] %v911_v8 }
  0xab   : > { %1040 = vst [vmem:[%s1573_s21 + $0x3e0] sm:$0xff] %v912_v11 }
  0xac   : > { %1041 = vst [vmem:[%s1573_s21 + $0x3e8] sm:$0xff] %v913_v13 }
  0xad   : > { %1042 = vst [vmem:[%s1573_s21 + $0x3f0] sm:$0xff] %v914_v14 }
  0xae   : > { %1043 = vst [vmem:[%s1573_s21 + $0x3f8] sm:$0xff] %v915_v15 }
  0xaf   : > { %1362 = shalt.err (!%p1359_p13)
}
  0xb0   : > { %s1425_s3 = smov 256   ;;  %s1426_s25 = smov 16  }
  0xb1   : > { %1208 = dma.vmem_to_hbm [thread:$0]  (%p1493_p9), %s1061_s20, 16384, %s1063_s26, %s1045_s19, %s1425_s3, %s1425_s3, %s1426_s25  }
  0xb2 PF: > { %s1077_s6 = sand.u32 1, %s1401_s9   ;;  %p1218_p0 = pnand %p1179_p12, %p1500_p11 }
  0xb3   : > { %s1078_s8 = scalar_lea.sflag [#allocation4], %s1077_s6 }
  0xb4   : > { %p1219_p1 = pneg %p1218_p0 }
  0xb6   : > { %1396 = dma.done.wait (%p1219_p1), %s1078_s8, 16384  }
  0xb7   : > { %1398 = vsyncadd (%p1219_p1), %s1078_s8, 4294950912  ;;  %s21_s14 = sadd.s32 1, %s1421_s14   ;;  %s2081_s9 = smov %s1405_s10 }
  0xb8   : > { %p18_p2 = scmp.ge.s32.totalorder %s21_s14, 4   ;;  %s2082_s10 = smov %s1409_s11 }
  0xb9   : > { %s2083_s11 = smov %s1498_s23  ;;  %s2084_s12 = smov %s1417_s13 }
  0xba   : > { %s2085_s13 = smov %s2087_s17  ;;  %20 = sbr.rel (!%p18_p2) target bundleno = 8 (0x8), region = 86 }
  0xbf   :  { %1084 = vsyncpa [#allocation3], 1 }
  0xc0   :  { %1086 = vsyncpa [#allocation3 + $0x1], 1 }
  0xc1   :  { %1087 = vsyncpa [#allocation6], 1 }
  0xc2   :  { %1089 = vsyncpa [#allocation6 + $0x1], 1 }
  0xc3   :  { %1090 = vsyncpa [#allocation4], 1 }
  0xc4   :  { %1092 = vsyncpa [#allocation4 + $0x1], 1 }

</bundles_post_ra>
